<compile_context>
chip_gen: v7x
topology: tpu7x:2x2x1
jax: 0.10.0
libtpu: 0.0.40
codegen_flags: <defaults>
</compile_context>

<pallas_src>
import functools

import jax
import jax.numpy as jnp
from jax.experimental import pallas as pl
from jax.experimental.pallas import tpu as pltpu


# ---------------------------------------------------------------------------
# Fused kernel: whole residual block for one image per grid step.
# ---------------------------------------------------------------------------
def _residual_block_kernel(x_ref, b1_ref, s1_ref, t1_ref,
                           b2_ref, s2_ref, t2_ref,
                           o_ref, pad_ref):
    """x_ref/o_ref: (1, H, W*C).  b*_ref: (3, W*C, W*C) row-Toeplitz weights.
    s*/t*: (1, W*C) folded BN scale/shift.  pad_ref: (H+2, W*C) VMEM halo."""
    H = o_ref.shape[1]

    x = x_ref[0]                                     # (H, W*C), stays in VMEM

    # In-kernel SAME padding along H: zero halo rows, write interior.
    # (W padding is already folded into the band structure of b*_ref.)
    pad_ref[...] = jnp.zeros_like(pad_ref)
    pad_ref[pl.ds(1, H), :] = x

    def conv_rows(b_ref):
        # 3 row-shifted MXU matmuls, K = W*Cin, N = W*Cout, f32 accumulation.
        acc = jnp.dot(pad_ref[pl.ds(0, H), :], b_ref[0],
                      preferred_element_type=jnp.float32)
        acc = acc + jnp.dot(pad_ref[pl.ds(1, H), :], b_ref[1],
                            preferred_element_type=jnp.float32)
        acc = acc + jnp.dot(pad_ref[pl.ds(2, H), :], b_ref[2],
                            preferred_element_type=jnp.float32)
        return acc

    # conv1 + bn1 + relu   (intermediate never leaves VMEM)
    out1 = jnp.maximum(conv_rows(b1_ref) * s1_ref[...] + t1_ref[...], 0.0)

    # Reuse the halo scratch for conv2 (border rows are still zero).
    pad_ref[pl.ds(1, H), :] = out1

    # conv2 + bn2 + residual add + relu
    y = conv_rows(b2_ref) * s2_ref[...] + t2_ref[...] + x
    o_ref[0] = jnp.maximum(y, 0.0).astype(o_ref.dtype)


# ---------------------------------------------------------------------------
# pallas_call wrapper (operates on row-flattened channels-last layout)
# ---------------------------------------------------------------------------
def _residual_block_flat(xf, b1, s1, t1, b2, s2, t2):
    """xf: (N, H, W*C) f32; returns same shape."""
    N, H, WC = xf.shape
    return pl.pallas_call(
        _residual_block_kernel,
        out_shape=jax.ShapeDtypeStruct((N, H, WC), jnp.float32),
        grid_spec=pltpu.PrefetchScalarGridSpec(
            num_scalar_prefetch=0,
            grid=(N,),                                   # one image per step
            in_specs=[
                pl.BlockSpec((1, H, WC), lambda n: (n, 0, 0)),   # x
                pl.BlockSpec(b1.shape, lambda n: (0, 0, 0)),     # conv1 weights
                pl.BlockSpec(s1.shape, lambda n: (0, 0)),        # bn1 scale
                pl.BlockSpec(t1.shape, lambda n: (0, 0)),        # bn1 shift
                pl.BlockSpec(b2.shape, lambda n: (0, 0, 0)),     # conv2 weights
                pl.BlockSpec(s2.shape, lambda n: (0, 0)),        # bn2 scale
                pl.BlockSpec(t2.shape, lambda n: (0, 0)),        # bn2 shift
            ],
            out_specs=pl.BlockSpec((1, H, WC), lambda n: (n, 0, 0)),
            scratch_shapes=[pltpu.VMEM((H + 2, WC), jnp.float32)],
        ),
        # Batch axis is independent -> megacore sharding on v7x.
        compiler_params=pltpu.CompilerParams(
            dimension_semantics=("parallel",)),
    )(xf, b1, s1, t1, b2, s2, t2)


@jax.jit
def residual_block_nchw(x_nchw, b1, s1, t1, b2, s2, t2):
    """Full ResidualBlock forward (stride=1, downsample=None, in_c == out_c)."""
    N, C, H, W = x_nchw.shape
    # NCHW -> NHWC -> row-flattened (N, H, W*C).  Both reshapes are
    # contiguous views; only the transpose moves data.
    xf = jnp.transpose(x_nchw, (0, 2, 3, 1)).reshape(N, H, W * C)
    yf = _residual_block_flat(xf, b1, s1, t1, b2, s2, t2)
    return jnp.transpose(yf.reshape(N, H, W, C), (0, 3, 1, 2))


# ---------------------------------------------------------------------------
# Parameter preparation (done once, outside the kernel)
# ---------------------------------------------------------------------------
def conv3x3_to_row_toeplitz(w_hwio, W):
    """(3,3,Cin,Cout) -> (3, W*Cin, W*Cout) banded matrices.

    B[kh][w'*Cin+ci, w*Cout+co] = w_hwio[kh, w'-w+1, ci, co] when |w'-w| <= 1,
    else 0.  Missing bands at w=0 / w=W-1 implement SAME padding along W.
    """
    _, _, Cin, Cout = w_hwio.shape
    B = jnp.zeros((3, W * Cin, W * Cout), w_hwio.dtype)
    for kh in range(3):
        for kw in range(3):
            for w in range(W):
                wp = w + kw - 1
                if 0 <= wp < W:
                    B = B.at[kh,
                             wp * Cin:(wp + 1) * Cin,
                             w * Cout:(w + 1) * Cout].set(w_hwio[kh, kw])
    return B


def tile_bn(vec, W):
    """Per-channel (C,) BN scale/shift -> lane-aligned (1, W*C)."""
    C = vec.shape[0]
    return jnp.tile(vec, W).reshape(1, W * C)


# ---------------------------------------------------------------------------
# Pure-JAX reference (for correctness check)
# ---------------------------------------------------------------------------
def _ref_block_nchw(x_nchw, w1_hwio, s1, b1, w2_hwio, s2, b2):
    x = jnp.transpose(x_nchw, (0, 2, 3, 1))
    conv = lambda a, w: jax.lax.conv_general_dilated(
        a, w, (1, 1), 'SAME', dimension_numbers=('NHWC', 'HWIO', 'NHWC'))
    y = jnp.maximum(conv(x, w1_hwio) * s1 + b1, 0.0)
    y = jnp.maximum(conv(y, w2_hwio) * s2 + b2 + x, 0.0)
    return jnp.transpose(y, (0, 3, 1, 2))


# ---------------------------------------------------------------------------
# Main
# ---------------------------------------------------------------------------
if __name__ == "__main__":
    N, C, H, W = 2, 4, 16, 16          # in_c == out_c == 4, stride=1
    key = jax.random.PRNGKey(0)
    (kx, kw1, kw2, kg1, kb1, km1, kv1,
     kg2, kb2, km2, kv2) = jax.random.split(key, 11)

    x = jax.random.normal(kx, (N, C, H, W), jnp.float32)      # NCHW like PyTorch

    # Conv weights in HWIO (3,3,Cin,Cout); no bias (nn.Conv2d(bias=False)).
    w1_hwio = jax.random.normal(kw1, (3, 3, C, C), jnp.float32) * 0.1
    w2_hwio = jax.random.normal(kw2, (3, 3, C, C), jnp.float32) * 0.1

    # BatchNorm parameters (inference mode), folded into scale/shift.
    eps = 1e-5
    gamma1 = 1.0 + 0.1 * jax.random.normal(kg1, (C,), jnp.float32)
    beta1 = 0.1 * jax.random.normal(kb1, (C,), jnp.float32)
    mean1 = 0.1 * jax.random.normal(km1, (C,), jnp.float32)
    var1 = 1.0 + 0.1 * jax.random.uniform(kv1, (C,), jnp.float32)
    gamma2 = 1.0 + 0.1 * jax.random.normal(kg2, (C,), jnp.float32)
    beta2 = 0.1 * jax.random.normal(kb2, (C,), jnp.float32)
    mean2 = 0.1 * jax.random.normal(km2, (C,), jnp.float32)
    var2 = 1.0 + 0.1 * jax.random.uniform(kv2, (C,), jnp.float32)

    s1 = gamma1 / jnp.sqrt(var1 + eps)
    sh1 = beta1 - mean1 * s1
    s2 = gamma2 / jnp.sqrt(var2 + eps)
    sh2 = beta2 - mean2 * s2

    # Kernel parameters: row-Toeplitz conv weights + lane-tiled BN params.
    B1 = conv3x3_to_row_toeplitz(w1_hwio, W)
    B2 = conv3x3_to_row_toeplitz(w2_hwio, W)
    s1t, sh1t = tile_bn(s1, W), tile_bn(sh1, W)
    s2t, sh2t = tile_bn(s2, W), tile_bn(sh2, W)

    out = residual_block_nchw(x, B1, s1t, sh1t, B2, s2t, sh2t)
    out = jax.block_until_ready(out)

    ref = _ref_block_nchw(x, w1_hwio, s1, sh1, w2_hwio, s2, sh2)
    assert out.shape == (N, C, H, W)
    assert jnp.allclose(out, ref, atol=1e-3, rtol=1e-3), "mismatch vs reference"

    print("KERNEL_OK")
</pallas_src>

<mosaic_0001>
module attributes {stable_mosaic.version = 11 : i64} {
  func.func @_residual_block_kernel(%arg0: i32, %arg1: memref<1x16x64xf32, #tpu.memory_space<vmem>>, %arg2: memref<3x64x64xf32, #tpu.memory_space<vmem>>, %arg3: memref<1x64xf32, #tpu.memory_space<vmem>>, %arg4: memref<1x64xf32, #tpu.memory_space<vmem>>, %arg5: memref<3x64x64xf32, #tpu.memory_space<vmem>>, %arg6: memref<1x64xf32, #tpu.memory_space<vmem>>, %arg7: memref<1x64xf32, #tpu.memory_space<vmem>>, %arg8: memref<1x16x64xf32, #tpu.memory_space<vmem>>, %arg9: memref<18x64xf32, #tpu.memory_space<vmem>>) attributes {dimension_semantics = [#tpu.dimension_semantics<parallel>], iteration_bounds = array<i64: 2>, scalar_prefetch = 0 : i64, scratch_operands = 1 : i64, tpu.core_type = #tpu.core_type<tc>, window_params = [{transform_indices = @transform_0, window_bounds = array<i64: 1, 16, 64>}, {pipeline_mode = #tpu.pipeline_mode<synchronous>, transform_indices = @transform_1, window_bounds = array<i64: 3, 64, 64>}, {pipeline_mode = #tpu.pipeline_mode<synchronous>, transform_indices = @transform_2, window_bounds = array<i64: 1, 64>}, {pipeline_mode = #tpu.pipeline_mode<synchronous>, transform_indices = @transform_3, window_bounds = array<i64: 1, 64>}, {pipeline_mode = #tpu.pipeline_mode<synchronous>, transform_indices = @transform_4, window_bounds = array<i64: 3, 64, 64>}, {pipeline_mode = #tpu.pipeline_mode<synchronous>, transform_indices = @transform_5, window_bounds = array<i64: 1, 64>}, {pipeline_mode = #tpu.pipeline_mode<synchronous>, transform_indices = @transform_6, window_bounds = array<i64: 1, 64>}, {transform_indices = @transform_7, window_bounds = array<i64: 1, 16, 64>}]} {
    %c0 = arith.constant 0 : index
    %c0_0 = arith.constant 0 : index
    %c0_1 = arith.constant 0 : index
    %0 = vector.load %arg1[%c0, %c0_0, %c0_1] : memref<1x16x64xf32, #tpu.memory_space<vmem>>, vector<1x16x64xf32>
    %1 = vector.shape_cast %0 : vector<1x16x64xf32> to vector<16x64xf32>
    %cst = arith.constant 0.000000e+00 : f32
    %2 = vector.broadcast %cst : f32 to vector<18x64xf32>
    %c0_2 = arith.constant 0 : index
    %c0_3 = arith.constant 0 : index
    %3 = vector.load %arg9[%c0_2, %c0_3] : memref<18x64xf32, #tpu.memory_space<vmem>>, vector<18x64xf32>
    tpu.vector_store %arg9[%c0_2, %c0_3], %2 {strides = array<i32>} : memref<18x64xf32, #tpu.memory_space<vmem>>, vector<18x64xf32>,
    %c1 = arith.constant 1 : index
    %c0_4 = arith.constant 0 : index
    %4 = vector.load %arg9[%c1, %c0_4] : memref<18x64xf32, #tpu.memory_space<vmem>>, vector<16x64xf32>
    tpu.vector_store %arg9[%c1, %c0_4], %1 {strides = array<i32>} : memref<18x64xf32, #tpu.memory_space<vmem>>, vector<16x64xf32>,
    %c0_5 = arith.constant 0 : index
    %c0_6 = arith.constant 0 : index
    %5 = vector.load %arg9[%c0_5, %c0_6] : memref<18x64xf32, #tpu.memory_space<vmem>>, vector<16x64xf32>
    %c0_7 = arith.constant 0 : index
    %c0_8 = arith.constant 0 : index
    %c0_9 = arith.constant 0 : index
    %6 = vector.load %arg2[%c0_7, %c0_8, %c0_9] : memref<3x64x64xf32, #tpu.memory_space<vmem>>, vector<1x64x64xf32>
    %7 = vector.shape_cast %6 : vector<1x64x64xf32> to vector<64x64xf32>
    %cst_10 = arith.constant dense<0.000000e+00> : vector<16x64xf32>
    %8 = tpu.matmul %5, %7, %cst_10 {dimension_numbers = #tpu.dot_dimension_numbers<[1], [0], [0], [1], [0, 0, 1, 1], [], []>} : vector<16x64xf32>, vector<64x64xf32>, vector<16x64xf32> -> vector<16x64xf32>
    %c1_11 = arith.constant 1 : index
    %c0_12 = arith.constant 0 : index
    %9 = vector.load %arg9[%c1_11, %c0_12] : memref<18x64xf32, #tpu.memory_space<vmem>>, vector<16x64xf32>
    %c1_13 = arith.constant 1 : index
    %c0_14 = arith.constant 0 : index
    %c0_15 = arith.constant 0 : index
    %10 = vector.load %arg2[%c1_13, %c0_14, %c0_15] : memref<3x64x64xf32, #tpu.memory_space<vmem>>, vector<1x64x64xf32>
    %11 = vector.shape_cast %10 : vector<1x64x64xf32> to vector<64x64xf32>
    %cst_16 = arith.constant dense<0.000000e+00> : vector<16x64xf32>
    %12 = tpu.matmul %9, %11, %cst_16 {dimension_numbers = #tpu.dot_dimension_numbers<[1], [0], [0], [1], [0, 0, 1, 1], [], []>} : vector<16x64xf32>, vector<64x64xf32>, vector<16x64xf32> -> vector<16x64xf32>
    %13 = arith.addf %8, %12 : vector<16x64xf32>
    %c2 = arith.constant 2 : index
    %c0_17 = arith.constant 0 : index
    %14 = vector.load %arg9[%c2, %c0_17] : memref<18x64xf32, #tpu.memory_space<vmem>>, vector<16x64xf32>
    %c2_18 = arith.constant 2 : index
    %c0_19 = arith.constant 0 : index
    %c0_20 = arith.constant 0 : index
    %15 = vector.load %arg2[%c2_18, %c0_19, %c0_20] : memref<3x64x64xf32, #tpu.memory_space<vmem>>, vector<1x64x64xf32>
    %16 = vector.shape_cast %15 : vector<1x64x64xf32> to vector<64x64xf32>
    %cst_21 = arith.constant dense<0.000000e+00> : vector<16x64xf32>
    %17 = tpu.matmul %14, %16, %cst_21 {dimension_numbers = #tpu.dot_dimension_numbers<[1], [0], [0], [1], [0, 0, 1, 1], [], []>} : vector<16x64xf32>, vector<64x64xf32>, vector<16x64xf32> -> vector<16x64xf32>
    %18 = arith.addf %13, %17 : vector<16x64xf32>
    %c0_22 = arith.constant 0 : index
    %c0_23 = arith.constant 0 : index
    %19 = vector.load %arg3[%c0_22, %c0_23] : memref<1x64xf32, #tpu.memory_space<vmem>>, vector<1x64xf32>
    %20 = vector.broadcast %19 : vector<1x64xf32> to vector<16x64xf32>
    %21 = arith.mulf %18, %20 : vector<16x64xf32>
    %c0_24 = arith.constant 0 : index
    %c0_25 = arith.constant 0 : index
    %22 = vector.load %arg4[%c0_24, %c0_25] : memref<1x64xf32, #tpu.memory_space<vmem>>, vector<1x64xf32>
    %23 = vector.broadcast %22 : vector<1x64xf32> to vector<16x64xf32>
    %24 = arith.addf %21, %23 : vector<16x64xf32>
    %cst_26 = arith.constant 0.000000e+00 : f32
    %25 = vector.broadcast %cst_26 : f32 to vector<16x64xf32>
    %26 = arith.maximumf %24, %25 : vector<16x64xf32>
    %c1_27 = arith.constant 1 : index
    %c0_28 = arith.constant 0 : index
    %27 = vector.load %arg9[%c1_27, %c0_28] : memref<18x64xf32, #tpu.memory_space<vmem>>, vector<16x64xf32>
    tpu.vector_store %arg9[%c1_27, %c0_28], %26 {strides = array<i32>} : memref<18x64xf32, #tpu.memory_space<vmem>>, vector<16x64xf32>,
    %c0_29 = arith.constant 0 : index
    %c0_30 = arith.constant 0 : index
    %28 = vector.load %arg9[%c0_29, %c0_30] : memref<18x64xf32, #tpu.memory_space<vmem>>, vector<16x64xf32>
    %c0_31 = arith.constant 0 : index
    %c0_32 = arith.constant 0 : index
    %c0_33 = arith.constant 0 : index
    %29 = vector.load %arg5[%c0_31, %c0_32, %c0_33] : memref<3x64x64xf32, #tpu.memory_space<vmem>>, vector<1x64x64xf32>
    %30 = vector.shape_cast %29 : vector<1x64x64xf32> to vector<64x64xf32>
    %cst_34 = arith.constant dense<0.000000e+00> : vector<16x64xf32>
    %31 = tpu.matmul %28, %30, %cst_34 {dimension_numbers = #tpu.dot_dimension_numbers<[1], [0], [0], [1], [0, 0, 1, 1], [], []>} : vector<16x64xf32>, vector<64x64xf32>, vector<16x64xf32> -> vector<16x64xf32>
    %c1_35 = arith.constant 1 : index
    %c0_36 = arith.constant 0 : index
    %32 = vector.load %arg9[%c1_35, %c0_36] : memref<18x64xf32, #tpu.memory_space<vmem>>, vector<16x64xf32>
    %c1_37 = arith.constant 1 : index
    %c0_38 = arith.constant 0 : index
    %c0_39 = arith.constant 0 : index
    %33 = vector.load %arg5[%c1_37, %c0_38, %c0_39] : memref<3x64x64xf32, #tpu.memory_space<vmem>>, vector<1x64x64xf32>
    %34 = vector.shape_cast %33 : vector<1x64x64xf32> to vector<64x64xf32>
    %cst_40 = arith.constant dense<0.000000e+00> : vector<16x64xf32>
    %35 = tpu.matmul %32, %34, %cst_40 {dimension_numbers = #tpu.dot_dimension_numbers<[1], [0], [0], [1], [0, 0, 1, 1], [], []>} : vector<16x64xf32>, vector<64x64xf32>, vector<16x64xf32> -> vector<16x64xf32>
    %36 = arith.addf %31, %35 : vector<16x64xf32>
    %c2_41 = arith.constant 2 : index
    %c0_42 = arith.constant 0 : index
    %37 = vector.load %arg9[%c2_41, %c0_42] : memref<18x64xf32, #tpu.memory_space<vmem>>, vector<16x64xf32>
    %c2_43 = arith.constant 2 : index
    %c0_44 = arith.constant 0 : index
    %c0_45 = arith.constant 0 : index
    %38 = vector.load %arg5[%c2_43, %c0_44, %c0_45] : memref<3x64x64xf32, #tpu.memory_space<vmem>>, vector<1x64x64xf32>
    %39 = vector.shape_cast %38 : vector<1x64x64xf32> to vector<64x64xf32>
    %cst_46 = arith.constant dense<0.000000e+00> : vector<16x64xf32>
    %40 = tpu.matmul %37, %39, %cst_46 {dimension_numbers = #tpu.dot_dimension_numbers<[1], [0], [0], [1], [0, 0, 1, 1], [], []>} : vector<16x64xf32>, vector<64x64xf32>, vector<16x64xf32> -> vector<16x64xf32>
    %41 = arith.addf %36, %40 : vector<16x64xf32>
    %c0_47 = arith.constant 0 : index
    %c0_48 = arith.constant 0 : index
    %42 = vector.load %arg6[%c0_47, %c0_48] : memref<1x64xf32, #tpu.memory_space<vmem>>, vector<1x64xf32>
    %43 = vector.broadcast %42 : vector<1x64xf32> to vector<16x64xf32>
    %44 = arith.mulf %41, %43 : vector<16x64xf32>
    %c0_49 = arith.constant 0 : index
    %c0_50 = arith.constant 0 : index
    %45 = vector.load %arg7[%c0_49, %c0_50] : memref<1x64xf32, #tpu.memory_space<vmem>>, vector<1x64xf32>
    %46 = vector.broadcast %45 : vector<1x64xf32> to vector<16x64xf32>
    %47 = arith.addf %44, %46 : vector<16x64xf32>
    %48 = arith.addf %47, %1 : vector<16x64xf32>
    %cst_51 = arith.constant 0.000000e+00 : f32
    %49 = vector.broadcast %cst_51 : f32 to vector<16x64xf32>
    %50 = arith.maximumf %48, %49 : vector<16x64xf32>
    %c0_52 = arith.constant 0 : index
    %c0_53 = arith.constant 0 : index
    %c0_54 = arith.constant 0 : index
    %51 = vector.load %arg8[%c0_52, %c0_53, %c0_54] : memref<1x16x64xf32, #tpu.memory_space<vmem>>, vector<1x16x64xf32>
    %52 = vector.shape_cast %51 : vector<1x16x64xf32> to vector<16x64xf32>
    %53 = vector.shape_cast %50 : vector<16x64xf32> to vector<1x16x64xf32>
    tpu.vector_store %arg8[%c0_52, %c0_53, %c0_54], %53 {strides = array<i32>} : memref<1x16x64xf32, #tpu.memory_space<vmem>>, vector<1x16x64xf32>,
    return
  }
  func.func @transform_0(%arg0: i32) -> (i32, i32, i32) {
    %c0_i32 = arith.constant 0 : i32
    %c0_i32_0 = arith.constant 0 : i32
    %c0_i32_1 = arith.constant 0 : i32
    return %arg0, %c0_i32, %c0_i32_0 : i32, i32, i32
  }
  func.func @transform_1(%arg0: i32) -> (i32, i32, i32) {
    %c0_i32 = arith.constant 0 : i32
    %c0_i32_0 = arith.constant 0 : i32
    %c0_i32_1 = arith.constant 0 : i32
    %c0_i32_2 = arith.constant 0 : i32
    return %c0_i32, %c0_i32_0, %c0_i32_1 : i32, i32, i32
  }
  func.func @transform_2(%arg0: i32) -> (i32, i32) {
    %c0_i32 = arith.constant 0 : i32
    %c0_i32_0 = arith.constant 0 : i32
    %c0_i32_1 = arith.constant 0 : i32
    return %c0_i32, %c0_i32_0 : i32, i32
  }
  func.func @transform_3(%arg0: i32) -> (i32, i32) {
    %c0_i32 = arith.constant 0 : i32
    %c0_i32_0 = arith.constant 0 : i32
    %c0_i32_1 = arith.constant 0 : i32
    return %c0_i32, %c0_i32_0 : i32, i32
  }
  func.func @transform_4(%arg0: i32) -> (i32, i32, i32) {
    %c0_i32 = arith.constant 0 : i32
    %c0_i32_0 = arith.constant 0 : i32
    %c0_i32_1 = arith.constant 0 : i32
    %c0_i32_2 = arith.constant 0 : i32
    return %c0_i32, %c0_i32_0, %c0_i32_1 : i32, i32, i32
  }
  func.func @transform_5(%arg0: i32) -> (i32, i32) {
    %c0_i32 = arith.constant 0 : i32
    %c0_i32_0 = arith.constant 0 : i32
    %c0_i32_1 = arith.constant 0 : i32
    return %c0_i32, %c0_i32_0 : i32, i32
  }
  func.func @transform_6(%arg0: i32) -> (i32, i32) {
    %c0_i32 = arith.constant 0 : i32
    %c0_i32_0 = arith.constant 0 : i32
    %c0_i32_1 = arith.constant 0 : i32
    return %c0_i32, %c0_i32_0 : i32, i32
  }
  func.func @transform_7(%arg0: i32) -> (i32, i32, i32) {
    %c0_i32 = arith.constant 0 : i32
    %c0_i32_0 = arith.constant 0 : i32
    %c0_i32_1 = arith.constant 0 : i32
    return %arg0, %c0_i32, %c0_i32_0 : i32, i32, i32
  }
}

</mosaic_0001>

<bundles_post_ra>
// kernel: residual_block_nchw.1
= control target key start
LH: loop header
LB: loop body
LE: loop exit
PB: predicated region body
PF: predicated region fallthrough
CT: control target
= control target key end

     0   :  { %s1340_s24 = smov 0   ;;  %s1548_s0 = inlined_call_operand.vmem [shape: f32[2,16,64], index: 0, kind: input, shape index: {}]   ;;  %s1549_s1 = inlined_call_operand.vmem [shape: f32[3,64,64], index: 1, kind: input, shape index: {}]   ;;  %s1550_s2 = inlined_call_operand.vmem [shape: f32[1,64], index: 2, kind: input, shape index: {}]   ;;  %s1551_s3 = inlined_call_operand.vmem [shape: f32[1,64], index: 3, kind: input, shape index: {}]   ;;  %s1552_s4 = inlined_call_operand.vmem [shape: f32[3,64,64], index: 4, kind: input, shape index: {}]   ;;  %s1553_s5 = inlined_call_operand.vmem [shape: f32[1,64], index: 5, kind: input, shape index: {}]   ;;  %s1554_s6 = inlined_call_operand.vmem [shape: f32[1,64], index: 6, kind: input, shape index: {}]   ;;  %s1555_s7 = inlined_call_operand.vmem [shape: f32[2,16,64], index: 7, kind: output, shape index: {}]  }
   0x1 LB: > { %s943_s25 = sadd.s32 4294967295, %s1297_s24   ;;  %p947_p0 = scmp.ge.s32.totalorder %s1297_s24, 1  ;;  %s1297_s24 = sphi %s1340_s24, %s17_s24  }
   0x2   : > { %p237_p1 = scmp.lt.s32.totalorder %s1297_s24, 3 }
   0x4   : > { %p238_p2 = pnand %p947_p0, %p237_p1 }
   0x5   : > { %v952_v0 = vld [vmem:[%s1549_s1 + $0x40] sm:$0xff] (!%p238_p2)  ;;  %v953_v1 = vld [vmem:[%s1549_s1 + $0x48] sm:$0xff] (!%p238_p2)  ;;  %v954_v2 = vld [vmem:[%s1549_s1 + $0x50] sm:$0xff] (!%p238_p2)  ;;  %p269_p3 = scmp.lt.s32.totalorder (!%p238_p2), %s943_s25, 1  ;;  %vm281_vm0 = vcmask (!%p238_p2), 523264   ;;  %v1299_v5 = vmov (!%p238_p2), 0.0  }
   0x6   : > { %241 = sbr.rel (%p238_p2) target bundleno = 540 (0x21c), region = 48  ;;  %v1178_v3 = vpack.c.bf16 (!%p238_p2), %v953_v1, %v952_v0  ;;  %v955_v4 = vld [vmem:[%s1549_s1 + $0x58] sm:$0xff] (!%p238_p2)  ;;  %282 = vst.msk [vmem:[#allocation2] sm:$0xff] (!%p238_p2), %vm281_vm0, %v1299_v5  ;;  %283 = vst.msk [vmem:[#allocation2 + $0x8] sm:$0xff] (!%p238_p2), %vm281_vm0, %v1299_v5  ;;  %vm284_vm1 = vcmask (!%p238_p2), 517120   ;;  %v956_v7 = vld [vmem:[%s1549_s1 + $0x60] sm:$0xff] (!%p238_p2) }
   0x7   : > { %v1182_v6 = vpack.c.bf16 (!%p238_p2), %v955_v4, %v954_v2  ;;  %v957_v8 = vld [vmem:[%s1549_s1 + $0x68] sm:$0xff] (!%p238_p2)  ;;  %285 = vst.msk [vmem:[#allocation2 + $0x10] sm:$0x3] (!%p238_p2), %vm284_vm1, %v1299_v5  ;;  %v958_v10 = vld [vmem:[%s1549_s1 + $0x70] sm:$0xff] (!%p238_p2)  ;;  %v959_v11 = vld [vmem:[%s1549_s1 + $0x78] sm:$0xff] (!%p238_p2) }
   0x8   : > { %1179 = vmatprep.subr.bf16.mxu0 (!%p238_p2), %v1178_v3  ;;  %v1186_v9 = vpack.c.bf16 (!%p238_p2), %v957_v8, %v956_v7  ;;  %v1190_v14 = vpack.c.bf16 (!%p238_p2), %v959_v11, %v958_v10  ;;  %v290_v15 = vld [vmem:[%s1549_s1] sm:$0xff] (!%p238_p2)  ;;  %v291_v16 = vld [vmem:[%s1549_s1 + $0x8] sm:$0xff] (!%p238_p2)  ;;  %v292_v19 = vld [vmem:[%s1549_s1 + $0x10] sm:$0xff] (!%p238_p2) }
   0x9   : > { %1181 = vmatpush3.bf16.msra.mxu0 (!%p238_p2), %v1178_v3  ;;  %v1194_v17 = vpack.c.bf16 (!%p238_p2), %v291_v16, %v290_v15  ;;  %v293_v20 = vld [vmem:[%s1549_s1 + $0x18] sm:$0xff] (!%p238_p2)  ;;  %v294_v24 = vld [vmem:[%s1549_s1 + $0x20] sm:$0xff] (!%p238_p2)  ;;  %v295_v25 = vld [vmem:[%s1549_s1 + $0x28] sm:$0xff] (!%p238_p2) }
   0xa   : > { %1183 = vmatprep.subr.bf16.mxu0 (!%p238_p2), %v1182_v6  ;;  %v1198_v22 = vpack.c.bf16 (!%p238_p2), %v293_v20, %v292_v19  ;;  %v1202_v26 = vpack.c.bf16 (!%p238_p2), %v295_v25, %v294_v24  ;;  %v296_v27 = vld [vmem:[%s1549_s1 + $0x30] sm:$0xff] (!%p238_p2)  ;;  %v297_v28 = vld [vmem:[%s1549_s1 + $0x38] sm:$0xff] (!%p238_p2)  ;;  %v964_v30 = vld [vmem:[%s1549_s1 + $0x80] sm:$0xff] (!%p238_p2) }
   0xb   : > { %v1206_v29 = vpack.c.bf16 (!%p238_p2), %v297_v28, %v296_v27  ;;  %v965_v31 = vld [vmem:[%s1549_s1 + $0x88] sm:$0xff] (!%p238_p2)  ;;  %v966_v33 = vld [vmem:[%s1549_s1 + $0x90] sm:$0xff] (!%p238_p2)  ;;  %v967_v34 = vld [vmem:[%s1549_s1 + $0x98] sm:$0xff] (!%p238_p2) }
   0xc   : > { %v1210_v32 = vpack.c.bf16 (!%p238_p2), %v965_v31, %v964_v30  ;;  %v1214_v36 = vpack.c.bf16 (!%p238_p2), %v967_v34, %v966_v33  ;;  %v968_v38 = vld [vmem:[%s1549_s1 + $0xa0] sm:$0xff] (!%p238_p2)  ;;  %v969_v39 = vld [vmem:[%s1549_s1 + $0xa8] sm:$0xff] (!%p238_p2)  ;;  %v970_v41 = vld [vmem:[%s1549_s1 + $0xb0] sm:$0xff] (!%p238_p2) }
   0xd   : > { %s1557_s25 = smov (!%p269_p3, %s943_s25), 1  ;;  %1185 = vmatpush3.bf16.msra.mxu0 %v1182_v6  ;;  %v1218_v40 = vpack.c.bf16 %v969_v39, %v968_v38  ;;  %v971_v42 = vld [vmem:[%s1549_s1 + $0xb8] sm:$0xff]  ;;  %v976_v45 = vld [vmem:[%s1552_s4 + $0x40] sm:$0xff]  ;;  %v977_v46 = vld [vmem:[%s1552_s4 + $0x48] sm:$0xff] }
   0xe   : > { %s1002_s15 = sshll.u32 %s1557_s25, 4  ;;  %1187 = vmatprep.subr.bf16.mxu0 %v1186_v9  ;;  %v1222_v43 = vpack.c.bf16 %v971_v42, %v970_v41  ;;  %v1226_v47 = vpack.c.bf16 %v977_v46, %v976_v45  ;;  %v978_v48 = vld [vmem:[%s1552_s4 + $0x50] sm:$0xff]  ;;  %v979_v49 = vld [vmem:[%s1552_s4 + $0x58] sm:$0xff]  ;;  %v980_v51 = vld [vmem:[%s1552_s4 + $0x60] sm:$0xff] }
   0xf   : > { %s273_s20 = scalar_lea.vmem %s1548_s0, %s1002_s15  ;;  %v1230_v50 = vpack.c.bf16 %v979_v49, %v978_v48  ;;  %v981_v52 = vld [vmem:[%s1552_s4 + $0x68] sm:$0xff]  ;;  %v982_v54 = vld [vmem:[%s1552_s4 + $0x70] sm:$0xff]  ;;  %v983_v55 = vld [vmem:[%s1552_s4 + $0x78] sm:$0xff]  ;;  %s278_s12 = scalar_lea.vmem %s1555_s7, %s1002_s15 }
  0x10   : > { %v1382_v12 = vld [vmem:[%s273_s20] sm:$0xff]  ;;  %v1384_v13 = vld [vmem:[%s273_s20 + $0x8] sm:$0xff]  ;;  %1227 = vmatprep.subr.bf16.mxu1 %v1226_v47  ;;  %v1234_v53 = vpack.c.bf16 %v981_v52, %v980_v51  ;;  %v1238_v56 = vpack.c.bf16 %v983_v55, %v982_v54  ;;  %v591_v6 = vld [vmem:[%s1552_s4 + $0x10] sm:$0xff] }
  0x11   : > { %286 = vst.msk [vmem:[#allocation2 + $0x1] sm:$0xff] %vm281_vm0, %v1382_v12  ;;  %287 = vst.msk [vmem:[#allocation2 + $0x9] sm:$0xff] %vm281_vm0, %v1384_v13  ;;  %1189 = vmatpush3.bf16.msra.mxu0 %v1186_v9  ;;  %1229 = vmatpush3.bf16.msra.mxu1 %v1226_v47  ;;  %v589_v57 = vld [vmem:[%s1552_s4] sm:$0xff]  ;;  %v590_v58 = vld [vmem:[%s1552_s4 + $0x8] sm:$0xff] }
  0x12   : > { %1191 = vmatprep.subr.bf16.mxu0 %v1190_v14  ;;  %1231 = vmatprep.subr.bf16.mxu1 %v1230_v50  ;;  %v1242_v59 = vpack.c.bf16 %v590_v58, %v589_v57  ;;  %v974_v60 = vld [vmem:[%s1550_s2] ss:$0 sm:$0xff]  ;;  %v592_v7 = vld [vmem:[%s1552_s4 + $0x18] sm:$0xff]  ;;  %v993_v28 = vld [vmem:[%s1552_s4 + $0xa8] sm:$0xff] }
  0x13   : > { %v975_v62 = vld [vmem:[%s1551_s3] ss:$0 sm:$0xff]  ;;  %v1246_v9 = vpack.c.bf16 %v592_v7, %v591_v6  ;;  %v991_v24 = vld [vmem:[%s1552_s4 + $0x98] sm:$0xff]  ;;  %v994_v31 = vld [vmem:[%s1552_s4 + $0xb0] sm:$0xff] }
  0x14   : > { %v593_v11 = vld [vmem:[%s1552_s4 + $0x20] sm:$0xff] }
  0x15   : > { %1193 = vmatpush3.bf16.msra.mxu0 %v1190_v14  ;;  %1233 = vmatpush3.bf16.msra.mxu1 %v1230_v50  ;;  %v594_v14 = vld [vmem:[%s1552_s4 + $0x28] sm:$0xff]  ;;  %v988_v20 = vld [vmem:[%s1552_s4 + $0x80] sm:$0xff] }
  0x16   : > { %1195 = vmatprep.subr.bf16.mxu0 %v1194_v17  ;;  %1235 = vmatprep.subr.bf16.mxu1 %v1234_v53  ;;  %v1250_v16 = vpack.c.bf16 %v594_v14, %v593_v11  ;;  %v992_v27 = vld [vmem:[%s1552_s4 + $0xa0] sm:$0xff] }
  0x17   : > { %v1266_v30 = vpack.c.bf16 %v993_v28, %v992_v27 }
  0x18   : > { %v298_v18 = vld [vmem:[#allocation2 + $0x1] sm:$0xff]  ;;  %v299_v21 = vld [vmem:[#allocation2 + $0x9] sm:$0xff] }
  0x19   : > { %1080 = vmatprep.mubr.msk.f32.mxu0 %vm281_vm0, %v298_v18  ;;  %v288_v23 = vld [vmem:[#allocation2] sm:$0xff]  ;;  %v289_v35 = vld [vmem:[#allocation2 + $0x8] sm:$0xff]  ;;  %1237 = vmatpush3.bf16.msra.mxu1 %v1234_v53  ;;  %v596_v18 = vld [vmem:[%s1552_s4 + $0x38] sm:$0xff] }
  0x1a   : > { %1081 = vmatmul.mubr.msk.f32.vlgmr.msra.gmra.mrb[0].mxu0 %vm281_vm0, %v299_v21  ;;  %v471_v37 = vld [vmem:[#allocation2 + $0x2] sm:$0xff]  ;;  %v472_v44 = vld [vmem:[#allocation2 + $0xa] sm:$0xff]  ;;  %1239 = vmatprep.subr.bf16.mxu1 %v1238_v56 }
  0x1b   : > { %1197 = vmatpush3.bf16.msra.mxu0 %v1194_v17  ;;  %1099 = vmatprep.mubr.msk.f32.mxu0 %vm281_vm0, %v288_v23  ;;  %v595_v17 = vld [vmem:[%s1552_s4 + $0x30] sm:$0xff]  ;;  %v989_v21 = vld [vmem:[%s1552_s4 + $0x88] sm:$0xff] }
  0x1c   : > { %1199 = vmatprep.subr.bf16.mxu0 %v1198_v22  ;;  %v1254_v19 = vpack.c.bf16 %v596_v18, %v595_v17  ;;  %v990_v23 = vld [vmem:[%s1552_s4 + $0x90] sm:$0xff] }
  0x1d   : > { %1241 = vmatpush3.bf16.msra.mxu1 %v1238_v56  ;;  %v1262_v25 = vpack.c.bf16 %v991_v24, %v990_v23 }
  0x1e   : > { %1243 = vmatprep.subr.bf16.mxu1 %v1242_v59 }
  0x1f   : > { %1201 = vmatpush3.bf16.msra.mxu0 %v1198_v22  ;;  %v1258_v22 = vpack.c.bf16 %v989_v21, %v988_v20 }
  0x20   : > { %1203 = vmatprep.subr.bf16.mxu0 %v1202_v26 }
  0x23   : > { %1205 = vmatpush3.bf16.msra.mxu0 %v1202_v26 }
  0x24   : > { %1207 = vmatprep.subr.bf16.mxu0 %v1206_v29 }
  0x27   : > { %1209 = vmatpush3.bf16.msra.mxu0 %v1206_v29 }
  0x28   : > { %1211 = vmatprep.subr.bf16.mxu0 %v1210_v32 }
  0x2a   : > { %1100 = vmatmul.mubr.msk.f32.vlgmr.msra.gmra.mrb[0].mxu0 %vm281_vm0, %v289_v35  ;;  %v998_v35 = vld [vmem:[%s1553_s5] ss:$0 sm:$0xff] }
  0x2b   : > { %1213 = vmatpush3.bf16.msra.mxu0 %v1210_v32  ;;  %1118 = vmatprep.mubr.msk.f32.mxu0 %vm281_vm0, %v471_v37  ;;  %v995_v32 = vld [vmem:[%s1552_s4 + $0xb8] sm:$0xff]  ;;  %v999_v37 = vld [vmem:[%s1554_s6] ss:$0 sm:$0xff] }
  0x2c   : > { %1215 = vmatprep.subr.bf16.mxu0 %v1214_v36  ;;  %v1270_v33 = vpack.c.bf16 %v995_v32, %v994_v31 }
  0x2f   : > { %1217 = vmatpush3.bf16.msra.mxu0 %v1214_v36 }
  0x30   : > { %1219 = vmatprep.subr.bf16.mxu0 %v1218_v40 }
  0x33   : > { %1221 = vmatpush3.bf16.msra.mxu0 %v1218_v40 }
  0x34   : > { %1223 = vmatprep.subr.bf16.mxu0 %v1222_v43 }
  0x37   : > { %1225 = vmatpush3.bf16.msra.mxu0 %v1222_v43 }
  0x3a   : > { %1119 = vmatmul.mubr.msk.f32.vlgmr.msra.gmra.mrb[0].mxu0 %vm281_vm0, %v472_v44 }
 0x10d   : > { %v1120_v61 = vpop.f32.mrb[0].mxu0 }
 0x10e   : > { %v573_v63 = vmul.f32 %v1120_v61, %v974_v60  ;;  %v554_v0 = vpop.f32.mrb[1].mxu0 }
 0x10f   : > { %v572_v1 = vmul.f32 %v974_v60, %v554_v0 }
 0x110   : > { %v582_v2 = vadd.f32 %v975_v62, %v573_v63 }
 0x111   : > { %v581_v3 = vadd.f32 %v975_v62, %v572_v1 }
 0x112   : > { %v584_v4 = vmax.f32 %v582_v2, 0.0 }
 0x113   : > { %v583_v5 = vmax.f32 %v581_v3, 0.0 }
 0x114   : > { %586 = vst.msk [vmem:[#allocation2 + $0x9] sm:$0xff] %vm281_vm0, %v584_v4 }
 0x115   : > { %585 = vst.msk [vmem:[#allocation2 + $0x1] sm:$0xff] %vm281_vm0, %v583_v5 }
 0x11b   : > { %v598_v10 = vld [vmem:[#allocation2 + $0x9] sm:$0xff] }
 0x11c   : > { %v597_v8 = vld [vmem:[#allocation2 + $0x1] sm:$0xff]  ;;  %v771_v34 = vld [vmem:[#allocation2 + $0xa] sm:$0xff] }
 0x11d   : > { %1137 = vmatprep.mubr.msk.f32.mxu1 %vm281_vm0, %v597_v8  ;;  %v587_v15 = vld [vmem:[#allocation2] sm:$0xff]  ;;  %v588_v26 = vld [vmem:[#allocation2 + $0x8] sm:$0xff] }
 0x11e   : > { %1138 = vmatmul.mubr.msk.f32.vlgmr.msra.gmra.mrb[0].mxu1 %vm281_vm0, %v598_v10  ;;  %v770_v29 = vld [vmem:[#allocation2 + $0x2] sm:$0xff] }
 0x11f   : > { %1245 = vmatpush3.bf16.msra.mxu1 %v1242_v59  ;;  %1156 = vmatprep.mubr.msk.f32.mxu1 %vm281_vm0, %v587_v15 }
 0x120   : > { %1247 = vmatprep.subr.bf16.mxu1 %v1246_v9 }
 0x123   : > { %1249 = vmatpush3.bf16.msra.mxu1 %v1246_v9 }
 0x124   : > { %1251 = vmatprep.subr.bf16.mxu1 %v1250_v16 }
 0x127   : > { %1253 = vmatpush3.bf16.msra.mxu1 %v1250_v16 }
 0x128   : > { %1255 = vmatprep.subr.bf16.mxu1 %v1254_v19 }
 0x12b   : > { %1257 = vmatpush3.bf16.msra.mxu1 %v1254_v19 }
 0x12c   : > { %1259 = vmatprep.subr.bf16.mxu1 %v1258_v22 }
 0x12e   : > { %1157 = vmatmul.mubr.msk.f32.vlgmr.msra.gmra.mrb[0].mxu1 %vm281_vm0, %v588_v26 }
 0x12f   : > { %1261 = vmatpush3.bf16.msra.mxu1 %v1258_v22  ;;  %1175 = vmatprep.mubr.msk.f32.mxu1 %vm281_vm0, %v770_v29 }
 0x130   : > { %1263 = vmatprep.subr.bf16.mxu1 %v1262_v25 }
 0x133   : > { %1265 = vmatpush3.bf16.msra.mxu1 %v1262_v25 }
 0x134   : > { %1267 = vmatprep.subr.bf16.mxu1 %v1266_v30 }
 0x137   : > { %1269 = vmatpush3.bf16.msra.mxu1 %v1266_v30 }
 0x138   : > { %1271 = vmatprep.subr.bf16.mxu1 %v1270_v33 }
 0x13b   : > { %1273 = vmatpush3.bf16.msra.mxu1 %v1270_v33 }
 0x13e   : > { %1176 = vmatmul.mubr.msk.f32.vlgmr.msra.gmra.mrb[0].mxu1 %vm281_vm0, %v771_v34 }
 0x211   : > { %v1177_v36 = vpop.f32.mrb[0].mxu1 }
 0x212   : > { %v872_v38 = vmul.f32 %v1177_v36, %v998_v35  ;;  %v853_v39 = vpop.f32.mrb[1].mxu1 }
 0x213   : > { %v871_v40 = vmul.f32 %v998_v35, %v853_v39 }
 0x214   : > { %v881_v41 = vadd.f32 %v999_v37, %v872_v38 }
 0x215   : > { %v880_v42 = vadd.f32 %v999_v37, %v871_v40 }
 0x216   : > { %v883_v43 = vadd.f32 %v881_v41, %v1384_v13 }
 0x217   : > { %v882_v44 = vadd.f32 %v880_v42, %v1382_v12 }
 0x218   : > { %v885_v45 = vmax.f32 %v883_v43, 0.0 }
 0x219   : > { %v884_v46 = vmax.f32 %v882_v44, 0.0 }
 0x21a   : > { %887 = vst.msk [vmem:[%s278_s12 + $0x8] sm:$0xff] %vm281_vm0, %v885_v45 }
 0x21b   : > { %886 = vst.msk [vmem:[%s278_s12] sm:$0xff] %vm281_vm0, %v884_v46 }
 0x21c PF: > { %s17_s24 = sadd.s32 1, %s1297_s24  }
 0x21d   : > { %p14_p4 = scmp.ge.s32.totalorder %s17_s24, 4  }
 0x21f   :  { %16 = sbr.rel (!%p14_p4) target bundleno = 1 (0x1), region = 82 }

</bundles_post_ra>
